<compile_context>
chip_gen: v5e
topology: v5e:2x2
jax: 0.10.0
libtpu: 0.0.40
codegen_flags: <defaults>
</compile_context>

<pallas_src>
import jax
import jax.numpy as jnp
from jax.experimental import pallas as pl
from jax.experimental.pallas import tpu as pltpu

HIDDEN1 = 128
HIDDEN2 = 64
LN_EPS = 1e-5
LEAKY_SLOPE = 0.01
MAX_TILE_B = 4096        # biggest batch tile (rows); well inside 32 MiB scoped VMEM
MIN_SPLIT_ROWS = 128     # only force >=2 grid steps (v7x dual-TC) when B >= 2*this


def _round_up(n, m):
    return ((n + m - 1) // m) * m


def _layer_norm(h, gamma, beta):
    mu = jnp.mean(h, axis=-1, keepdims=True)
    var = jnp.mean((h - mu) ** 2, axis=-1, keepdims=True)
    return (h - mu) * jax.lax.rsqrt(var + LN_EPS) * gamma + beta


def _leaky_relu(h):
    return jnp.where(h > 0, h, LEAKY_SLOPE * h)


def mlp_kernel(x_ref, w1_ref, v1_ref, w2_ref, v2_ref, w3_ref, b3_ref, o_ref):
    # x arrives f32; cast to bf16 in-kernel (VPU slots are idle, avoids a
    # separate XLA convert pass over x in HBM).  Matmuls accumulate in f32.
    x = x_ref[...].astype(jnp.bfloat16)

    v1 = v1_ref[...]   # (3, 128) f32 rows: [b1; gamma1; beta1]
    v2 = v2_ref[...]   # (3, 64)  f32 rows: [b2; gamma2; beta2]

    # fc1 + LayerNorm(128) + LeakyReLU   (LN / activation math in f32)
    h = jnp.dot(x, w1_ref[...], preferred_element_type=jnp.float32) + v1[0:1, :]
    h = _leaky_relu(_layer_norm(h, v1[1:2, :], v1[2:3, :]))

    # Dropout(0.5): identity in eval mode.
    # TODO(synk): training-mode dropout (pltpu.prng_random_bits mask) not implemented.

    # fc2 + LayerNorm(64) + LeakyReLU
    h = jnp.dot(h.astype(jnp.bfloat16), w2_ref[...],
                preferred_element_type=jnp.float32) + v2[0:1, :]
    h = _leaky_relu(_layer_norm(h, v2[1:2, :], v2[2:3, :]))

    # fc3: unpadded (tile_b, d_out) store.  A 16-lane masked vst is cheaper
    # than writing 8x zero-padded f32 lanes + a post-kernel slice pass.
    y = jnp.dot(h.astype(jnp.bfloat16), w3_ref[...],
                preferred_element_type=jnp.float32) + b3_ref[...]
    o_ref[...] = y.astype(o_ref.dtype)


def prepare_params(params):
    """One-time conversion of f32 module params into kernel-friendly form.

    Done once (not per forward call): bf16 weight casts + packing the small
    per-layer vectors so the kernel takes 7 inputs instead of 11.
    """
    return {
        "w1": params["w1"].astype(jnp.bfloat16),
        "v1": jnp.concatenate([params["b1"], params["g1"], params["be1"]], axis=0),
        "w2": params["w2"].astype(jnp.bfloat16),
        "v2": jnp.concatenate([params["b2"], params["g2"], params["be2"]], axis=0),
        "w3": params["w3"].astype(jnp.bfloat16),
        "b3": params["b3"],
    }


def trump_predictor_forward(x, prep, *, tile_b=None):
    B, d_in = x.shape
    d_out = prep["w3"].shape[1]

    # ---- batch tiling -------------------------------------------------
    if tile_b is None:
        n_tiles = max(1, -(-B // MAX_TILE_B))          # cdiv
        # v7x has 2 TensorCores; make sure the "parallel" batch axis has at
        # least 2 steps to shard across them when the batch is big enough.
        if n_tiles == 1 and B >= 2 * MIN_SPLIT_ROWS:
            n_tiles = 2
        tile_b = _round_up(-(-B // n_tiles), 8)        # last tile nearly full
    assert tile_b % 8 == 0
    n_tiles = -(-B // tile_b)
    B_p = n_tiles * tile_b

    # Pad batch rows only if needed (no-op when tile_b divides B).  Padded
    # zero rows give finite LayerNorm garbage (var=0 -> rsqrt(1e-5)); they are
    # sliced off below and must never be reduced over.
    x_p = x if B_p == B else jnp.pad(x, ((0, B_p - B), (0, 0)))

    # Parameter blocks: full array, constant index_map -> resident across the
    # whole batch grid.
    def full2d(arr):
        return pl.BlockSpec(arr.shape, lambda i: (0, 0))

    in_specs = [
        pl.BlockSpec((tile_b, d_in), lambda i: (i, 0)),   # x tile (f32)
        full2d(prep["w1"]), full2d(prep["v1"]),
        full2d(prep["w2"]), full2d(prep["v2"]),
        full2d(prep["w3"]), full2d(prep["b3"]),
    ]
    out_spec = pl.BlockSpec((tile_b, d_out), lambda i: (i, 0))

    flops = 2 * B_p * (d_in * HIDDEN1 + HIDDEN1 * HIDDEN2 + HIDDEN2 * d_out)
    bytes_accessed = (
        x_p.size * 4
        + (prep["w1"].size + prep["w2"].size + prep["w3"].size) * 2
        + (prep["v1"].size + prep["v2"].size + prep["b3"].size) * 4
        + B_p * d_out * 4
    )
    cost = pl.CostEstimate(flops=flops,
                           transcendentals=2 * B_p,       # rsqrt per LN row
                           bytes_accessed=bytes_accessed)

    out = pl.pallas_call(
        mlp_kernel,
        out_shape=jax.ShapeDtypeStruct((B_p, d_out), jnp.float32),
        grid_spec=pltpu.PrefetchScalarGridSpec(
            num_scalar_prefetch=0,
            grid=(n_tiles,),
            in_specs=in_specs,
            out_specs=out_spec,
        ),
        compiler_params=pltpu.CompilerParams(
            dimension_semantics=("parallel",)),
        cost_estimate=cost,
    )(x_p, prep["w1"], prep["v1"], prep["w2"], prep["v2"],
      prep["w3"], prep["b3"])

    return out if B_p == B else out[:B]


def init_params(key, input_size, output_size):
    ks = jax.random.split(key, 6)
    scale1 = 1.0 / jnp.sqrt(input_size)
    scale2 = 1.0 / jnp.sqrt(HIDDEN1)
    scale3 = 1.0 / jnp.sqrt(HIDDEN2)
    return {
        "w1": jax.random.uniform(ks[0], (input_size, HIDDEN1), jnp.float32,
                                 -scale1, scale1),
        "b1": jax.random.uniform(ks[1], (1, HIDDEN1), jnp.float32,
                                 -scale1, scale1),
        "g1": jnp.ones((1, HIDDEN1), jnp.float32),
        "be1": jnp.zeros((1, HIDDEN1), jnp.float32),
        "w2": jax.random.uniform(ks[2], (HIDDEN1, HIDDEN2), jnp.float32,
                                 -scale2, scale2),
        "b2": jax.random.uniform(ks[3], (1, HIDDEN2), jnp.float32,
                                 -scale2, scale2),
        "g2": jnp.ones((1, HIDDEN2), jnp.float32),
        "be2": jnp.zeros((1, HIDDEN2), jnp.float32),
        "w3": jax.random.uniform(ks[4], (HIDDEN2, output_size), jnp.float32,
                                 -scale3, scale3),
        "b3": jax.random.uniform(ks[5], (1, output_size), jnp.float32,
                                 -scale3, scale3),
    }


def reference_forward(x, p):
    """Pure-JAX reference matching the kernel's bf16-matmul / f32-LN numerics."""
    def bdot(a, w):
        return jnp.dot(a.astype(jnp.bfloat16), w.astype(jnp.bfloat16),
                       preferred_element_type=jnp.float32)

    h = bdot(x, p["w1"]) + p["b1"]
    mu = h.mean(-1, keepdims=True)
    var = ((h - mu) ** 2).mean(-1, keepdims=True)
    h = (h - mu) / jnp.sqrt(var + LN_EPS) * p["g1"] + p["be1"]
    h = jnp.where(h > 0, h, LEAKY_SLOPE * h)

    h = bdot(h, p["w2"]) + p["b2"]
    mu = h.mean(-1, keepdims=True)
    var = ((h - mu) ** 2).mean(-1, keepdims=True)
    h = (h - mu) / jnp.sqrt(var + LN_EPS) * p["g2"] + p["be2"]
    h = jnp.where(h > 0, h, LEAKY_SLOPE * h)

    return bdot(h, p["w3"]) + p["b3"]


if __name__ == "__main__":
    key = jax.random.PRNGKey(0)
    k_x, k_p = jax.random.split(key)

    batch = 8
    input_size = 32
    output_size = 16

    x = jax.random.normal(k_x, (batch, input_size), jnp.float32)
    params = init_params(k_p, input_size, output_size)

    # Weight prep done once, outside the forward path; forward is jitted so
    # any residual wrapper ops (row padding) fuse into a single pass.
    prep = prepare_params(params)
    fwd = jax.jit(trump_predictor_forward)

    out = fwd(x, prep)
    out = jax.block_until_ready(out)

    ref = reference_forward(x, params)
    assert out.shape == (batch, output_size)
    assert jnp.allclose(out, ref, atol=1e-2, rtol=1e-2), (
        f"max abs err {jnp.max(jnp.abs(out - ref))}")
    print("KERNEL_OK")
</pallas_src>

<mosaic_0001>
module attributes {stable_mosaic.version = 11 : i64} {
  func.func @mlp_kernel(%arg0: i32, %arg1: memref<8x32xf32, #tpu.memory_space<vmem>>, %arg2: memref<32x128xbf16, #tpu.memory_space<vmem>>, %arg3: memref<3x128xf32, #tpu.memory_space<vmem>>, %arg4: memref<128x64xbf16, #tpu.memory_space<vmem>>, %arg5: memref<3x64xf32, #tpu.memory_space<vmem>>, %arg6: memref<64x16xbf16, #tpu.memory_space<vmem>>, %arg7: memref<1x16xf32, #tpu.memory_space<vmem>>, %arg8: memref<8x16xf32, #tpu.memory_space<vmem>>) attributes {dimension_semantics = [#tpu.dimension_semantics<parallel>], iteration_bounds = array<i64: 1>, scalar_prefetch = 0 : i64, scratch_operands = 0 : i64, tpu.core_type = #tpu.core_type<tc>, window_params = [{transform_indices = @transform_0, window_bounds = array<i64: 8, 32>}, {pipeline_mode = #tpu.pipeline_mode<synchronous>, transform_indices = @transform_1, window_bounds = array<i64: 32, 128>}, {pipeline_mode = #tpu.pipeline_mode<synchronous>, transform_indices = @transform_2, window_bounds = array<i64: 3, 128>}, {pipeline_mode = #tpu.pipeline_mode<synchronous>, transform_indices = @transform_3, window_bounds = array<i64: 128, 64>}, {pipeline_mode = #tpu.pipeline_mode<synchronous>, transform_indices = @transform_4, window_bounds = array<i64: 3, 64>}, {pipeline_mode = #tpu.pipeline_mode<synchronous>, transform_indices = @transform_5, window_bounds = array<i64: 64, 16>}, {pipeline_mode = #tpu.pipeline_mode<synchronous>, transform_indices = @transform_6, window_bounds = array<i64: 1, 16>}, {transform_indices = @transform_7, window_bounds = array<i64: 8, 16>}]} {
    %c0 = arith.constant 0 : index
    %c0_0 = arith.constant 0 : index
    %0 = vector.load %arg1[%c0, %c0_0] : memref<8x32xf32, #tpu.memory_space<vmem>>, vector<8x32xf32>
    %1 = arith.truncf %0 : vector<8x32xf32> to vector<8x32xbf16>
    %c0_1 = arith.constant 0 : index
    %c0_2 = arith.constant 0 : index
    %2 = vector.load %arg3[%c0_1, %c0_2] : memref<3x128xf32, #tpu.memory_space<vmem>>, vector<3x128xf32>
    %c0_3 = arith.constant 0 : index
    %c0_4 = arith.constant 0 : index
    %3 = vector.load %arg5[%c0_3, %c0_4] : memref<3x64xf32, #tpu.memory_space<vmem>>, vector<3x64xf32>
    %c0_5 = arith.constant 0 : index
    %c0_6 = arith.constant 0 : index
    %4 = vector.load %arg2[%c0_5, %c0_6] : memref<32x128xbf16, #tpu.memory_space<vmem>>, vector<32x128xbf16>
    %cst = arith.constant dense<0.000000e+00> : vector<8x128xf32>
    %5 = tpu.matmul %1, %4, %cst {dimension_numbers = #tpu.dot_dimension_numbers<[1], [0], [0], [1], [0, 0, 1, 1], [], []>} : vector<8x32xbf16>, vector<32x128xbf16>, vector<8x128xf32> -> vector<8x128xf32>
    %6 = vector.extract_strided_slice %2 {offsets = [0, 0], sizes = [1, 128], strides = [1, 1]} : vector<3x128xf32> to vector<1x128xf32>
    %7 = vector.broadcast %6 : vector<1x128xf32> to vector<8x128xf32>
    %8 = arith.addf %5, %7 : vector<8x128xf32>
    %9 = vector.extract_strided_slice %2 {offsets = [1, 0], sizes = [1, 128], strides = [1, 1]} : vector<3x128xf32> to vector<1x128xf32>
    %10 = vector.extract_strided_slice %2 {offsets = [2, 0], sizes = [1, 128], strides = [1, 1]} : vector<3x128xf32> to vector<1x128xf32>
    %cst_7 = arith.constant dense<0.000000e+00> : vector<8xf32>
    %11 = vector.multi_reduction <add>, %8, %cst_7 [1] : vector<8x128xf32> to vector<8xf32>
    %12 = vector.shape_cast %11 : vector<8xf32> to vector<8x1xf32>
    %cst_8 = arith.constant 1.280000e+02 : f32
    %13 = vector.broadcast %cst_8 : f32 to vector<8x1xf32>
    %14 = arith.divf %12, %13 : vector<8x1xf32>
    %15 = vector.broadcast %14 : vector<8x1xf32> to vector<8x128xf32>
    %16 = arith.subf %8, %15 : vector<8x128xf32>
    %17 = arith.mulf %16, %16 : vector<8x128xf32>
    %cst_9 = arith.constant dense<0.000000e+00> : vector<8xf32>
    %18 = vector.multi_reduction <add>, %17, %cst_9 [1] : vector<8x128xf32> to vector<8xf32>
    %19 = vector.shape_cast %18 : vector<8xf32> to vector<8x1xf32>
    %cst_10 = arith.constant 1.280000e+02 : f32
    %20 = vector.broadcast %cst_10 : f32 to vector<8x1xf32>
    %21 = arith.divf %19, %20 : vector<8x1xf32>
    %22 = vector.broadcast %14 : vector<8x1xf32> to vector<8x128xf32>
    %23 = arith.subf %8, %22 : vector<8x128xf32>
    %cst_11 = arith.constant 9.99999974E-6 : f32
    %24 = vector.broadcast %cst_11 : f32 to vector<8x1xf32>
    %25 = arith.addf %21, %24 : vector<8x1xf32>
    %26 = math.rsqrt %25 : vector<8x1xf32>
    %27 = vector.broadcast %26 : vector<8x1xf32> to vector<8x128xf32>
    %28 = arith.mulf %23, %27 : vector<8x128xf32>
    %29 = vector.broadcast %9 : vector<1x128xf32> to vector<8x128xf32>
    %30 = arith.mulf %28, %29 : vector<8x128xf32>
    %31 = vector.broadcast %10 : vector<1x128xf32> to vector<8x128xf32>
    %32 = arith.addf %30, %31 : vector<8x128xf32>
    %cst_12 = arith.constant 0.000000e+00 : f32
    %33 = vector.broadcast %cst_12 : f32 to vector<8x128xf32>
    %34 = arith.cmpf ogt, %32, %33 : vector<8x128xf32>
    %cst_13 = arith.constant 0.00999999977 : f32
    %35 = vector.broadcast %cst_13 : f32 to vector<8x128xf32>
    %36 = arith.mulf %35, %32 : vector<8x128xf32>
    %37 = arith.select %34, %32, %36 : vector<8x128xi1>, vector<8x128xf32>
    %38 = arith.truncf %37 : vector<8x128xf32> to vector<8x128xbf16>
    %c0_14 = arith.constant 0 : index
    %c0_15 = arith.constant 0 : index
    %39 = vector.load %arg4[%c0_14, %c0_15] : memref<128x64xbf16, #tpu.memory_space<vmem>>, vector<128x64xbf16>
    %cst_16 = arith.constant dense<0.000000e+00> : vector<8x64xf32>
    %40 = tpu.matmul %38, %39, %cst_16 {dimension_numbers = #tpu.dot_dimension_numbers<[1], [0], [0], [1], [0, 0, 1, 1], [], []>} : vector<8x128xbf16>, vector<128x64xbf16>, vector<8x64xf32> -> vector<8x64xf32>
    %41 = vector.extract_strided_slice %3 {offsets = [0, 0], sizes = [1, 64], strides = [1, 1]} : vector<3x64xf32> to vector<1x64xf32>
    %42 = vector.broadcast %41 : vector<1x64xf32> to vector<8x64xf32>
    %43 = arith.addf %40, %42 : vector<8x64xf32>
    %44 = vector.extract_strided_slice %3 {offsets = [1, 0], sizes = [1, 64], strides = [1, 1]} : vector<3x64xf32> to vector<1x64xf32>
    %45 = vector.extract_strided_slice %3 {offsets = [2, 0], sizes = [1, 64], strides = [1, 1]} : vector<3x64xf32> to vector<1x64xf32>
    %cst_17 = arith.constant dense<0.000000e+00> : vector<8xf32>
    %46 = vector.multi_reduction <add>, %43, %cst_17 [1] : vector<8x64xf32> to vector<8xf32>
    %47 = vector.shape_cast %46 : vector<8xf32> to vector<8x1xf32>
    %cst_18 = arith.constant 6.400000e+01 : f32
    %48 = vector.broadcast %cst_18 : f32 to vector<8x1xf32>
    %49 = arith.divf %47, %48 : vector<8x1xf32>
    %50 = vector.broadcast %49 : vector<8x1xf32> to vector<8x64xf32>
    %51 = arith.subf %43, %50 : vector<8x64xf32>
    %52 = arith.mulf %51, %51 : vector<8x64xf32>
    %cst_19 = arith.constant dense<0.000000e+00> : vector<8xf32>
    %53 = vector.multi_reduction <add>, %52, %cst_19 [1] : vector<8x64xf32> to vector<8xf32>
    %54 = vector.shape_cast %53 : vector<8xf32> to vector<8x1xf32>
    %cst_20 = arith.constant 6.400000e+01 : f32
    %55 = vector.broadcast %cst_20 : f32 to vector<8x1xf32>
    %56 = arith.divf %54, %55 : vector<8x1xf32>
    %57 = vector.broadcast %49 : vector<8x1xf32> to vector<8x64xf32>
    %58 = arith.subf %43, %57 : vector<8x64xf32>
    %cst_21 = arith.constant 9.99999974E-6 : f32
    %59 = vector.broadcast %cst_21 : f32 to vector<8x1xf32>
    %60 = arith.addf %56, %59 : vector<8x1xf32>
    %61 = math.rsqrt %60 : vector<8x1xf32>
    %62 = vector.broadcast %61 : vector<8x1xf32> to vector<8x64xf32>
    %63 = arith.mulf %58, %62 : vector<8x64xf32>
    %64 = vector.broadcast %44 : vector<1x64xf32> to vector<8x64xf32>
    %65 = arith.mulf %63, %64 : vector<8x64xf32>
    %66 = vector.broadcast %45 : vector<1x64xf32> to vector<8x64xf32>
    %67 = arith.addf %65, %66 : vector<8x64xf32>
    %cst_22 = arith.constant 0.000000e+00 : f32
    %68 = vector.broadcast %cst_22 : f32 to vector<8x64xf32>
    %69 = arith.cmpf ogt, %67, %68 : vector<8x64xf32>
    %cst_23 = arith.constant 0.00999999977 : f32
    %70 = vector.broadcast %cst_23 : f32 to vector<8x64xf32>
    %71 = arith.mulf %70, %67 : vector<8x64xf32>
    %72 = arith.select %69, %67, %71 : vector<8x64xi1>, vector<8x64xf32>
    %73 = arith.truncf %72 : vector<8x64xf32> to vector<8x64xbf16>
    %c0_24 = arith.constant 0 : index
    %c0_25 = arith.constant 0 : index
    %74 = vector.load %arg6[%c0_24, %c0_25] : memref<64x16xbf16, #tpu.memory_space<vmem>>, vector<64x16xbf16>
    %cst_26 = arith.constant dense<0.000000e+00> : vector<8x16xf32>
    %75 = tpu.matmul %73, %74, %cst_26 {dimension_numbers = #tpu.dot_dimension_numbers<[1], [0], [0], [1], [0, 0, 1, 1], [], []>} : vector<8x64xbf16>, vector<64x16xbf16>, vector<8x16xf32> -> vector<8x16xf32>
    %c0_27 = arith.constant 0 : index
    %c0_28 = arith.constant 0 : index
    %76 = vector.load %arg7[%c0_27, %c0_28] : memref<1x16xf32, #tpu.memory_space<vmem>>, vector<1x16xf32>
    %77 = vector.broadcast %76 : vector<1x16xf32> to vector<8x16xf32>
    %78 = arith.addf %75, %77 : vector<8x16xf32>
    %c0_29 = arith.constant 0 : index
    %c0_30 = arith.constant 0 : index
    %79 = vector.load %arg8[%c0_29, %c0_30] : memref<8x16xf32, #tpu.memory_space<vmem>>, vector<8x16xf32>
    tpu.vector_store %arg8[%c0_29, %c0_30], %78 {strides = array<i32>} : memref<8x16xf32, #tpu.memory_space<vmem>>, vector<8x16xf32>,
    return
  }
  func.func @transform_0(%arg0: i32) -> (i32, i32) {
    %c0_i32 = arith.constant 0 : i32
    %c0_i32_0 = arith.constant 0 : i32
    return %arg0, %c0_i32 : i32, i32
  }
  func.func @transform_1(%arg0: i32) -> (i32, i32) {
    %c0_i32 = arith.constant 0 : i32
    %c0_i32_0 = arith.constant 0 : i32
    %c0_i32_1 = arith.constant 0 : i32
    return %c0_i32, %c0_i32_0 : i32, i32
  }
  func.func @transform_2(%arg0: i32) -> (i32, i32) {
    %c0_i32 = arith.constant 0 : i32
    %c0_i32_0 = arith.constant 0 : i32
    %c0_i32_1 = arith.constant 0 : i32
    return %c0_i32, %c0_i32_0 : i32, i32
  }
  func.func @transform_3(%arg0: i32) -> (i32, i32) {
    %c0_i32 = arith.constant 0 : i32
    %c0_i32_0 = arith.constant 0 : i32
    %c0_i32_1 = arith.constant 0 : i32
    return %c0_i32, %c0_i32_0 : i32, i32
  }
  func.func @transform_4(%arg0: i32) -> (i32, i32) {
    %c0_i32 = arith.constant 0 : i32
    %c0_i32_0 = arith.constant 0 : i32
    %c0_i32_1 = arith.constant 0 : i32
    return %c0_i32, %c0_i32_0 : i32, i32
  }
  func.func @transform_5(%arg0: i32) -> (i32, i32) {
    %c0_i32 = arith.constant 0 : i32
    %c0_i32_0 = arith.constant 0 : i32
    %c0_i32_1 = arith.constant 0 : i32
    return %c0_i32, %c0_i32_0 : i32, i32
  }
  func.func @transform_6(%arg0: i32) -> (i32, i32) {
    %c0_i32 = arith.constant 0 : i32
    %c0_i32_0 = arith.constant 0 : i32
    %c0_i32_1 = arith.constant 0 : i32
    return %c0_i32, %c0_i32_0 : i32, i32
  }
  func.func @transform_7(%arg0: i32) -> (i32, i32) {
    %c0_i32 = arith.constant 0 : i32
    %c0_i32_0 = arith.constant 0 : i32
    return %arg0, %c0_i32 : i32, i32
  }
}

</mosaic_0001>

<bundles_post_ra>
// kernel: trump_predictor_forward.1
= control target key start
LH: loop header
LB: loop body
LE: loop exit
PB: predicated region body
PF: predicated region fallthrough
CT: control target
= control target key end

     0   :  { %s500_s0 = inlined_call_operand.vmem [shape: f32[8,32], index: 0, kind: input, shape index: {}]   ;;  %s501_s1 = inlined_call_operand.vmem [shape: bf16[32,128], index: 1, kind: input, shape index: {}]   ;;  %s502_s2 = inlined_call_operand.vmem [shape: f32[3,128], index: 2, kind: input, shape index: {}]   ;;  %s503_s3 = inlined_call_operand.vmem [shape: bf16[128,64], index: 3, kind: input, shape index: {}]   ;;  %s504_s4 = inlined_call_operand.vmem [shape: f32[3,64], index: 4, kind: input, shape index: {}]   ;;  %s505_s5 = inlined_call_operand.vmem [shape: bf16[64,16], index: 5, kind: input, shape index: {}]   ;;  %s506_s6 = inlined_call_operand.vmem [shape: f32[1,16], index: 6, kind: input, shape index: {}]   ;;  %s507_s7 = inlined_call_operand.hbm [shape: f32[8,16], index: 7, kind: output, shape index: {}]  }
   0x1   :  { %v346_v0 = vld [vmem:[%s501_s1 + $0x8] sm:$0xff] }
   0x2   :  { %12 = vsyncpa [#allocation3], 0  ;;  %59 = vmatpush.bf16.msra.mxu0 %v346_v0  ;;  %v345_v1 = vld [vmem:[%s501_s1] sm:$0xff]  ;;  %vm49_vm0 = vcmask 261120   ;;  %v397_v9 = vmov 128.0   ;;  %v354_v20 = vld [vmem:[%s503_s3 + $0x38] sm:$0xff] }
   0x3   :  { %v28_v2 = vld [vmem:[%s500_s0] sm:$0xff]  ;;  %363 = vrcp.f32 %v397_v9  ;;  %166 = vmatpush.bf16.msra.mxu1 %v354_v20  ;;  %v353_v21 = vld [vmem:[%s503_s3 + $0x30] sm:$0xff]  ;;  %v352_v22 = vld [vmem:[%s503_s3 + $0x28] sm:$0xff]  ;;  %vm179_vm6 = vcmask 523264   ;;  %v398_v52 = vmov 64.0   ;;  %s399_s8 = smov [#allocation2]  }
   0x4   :  { %v29_v3 = vpack.c.bf16 %v28_v2, %v28_v2  ;;  %v30_v4 = vld [vmem:[%s502_s2] sm:$0x7]  ;;  %v350_v24 = vld [vmem:[%s503_s3 + $0x18] sm:$0xff]  ;;  %v349_v25 = vld [vmem:[%s503_s3 + $0x10] sm:$0xff]  ;;  %s276_s0 = sshll.u32 %s399_s8, 4  ;;  %s278_s9 = sshll.u32 %s507_s7, 4  ;;  %s277_s0 = int_to_ptr.vmem [resolvable:$true] %s276_s0  ;;  %s279_s9 = int_to_ptr.hbm [resolvable:$true] %s278_s9 }
   0x5   :  { %v36_v5 = vperm.slane %v30_v4, 0  ;;  %v351_v23 = vld [vmem:[%s503_s3 + $0x20] sm:$0xff]  ;;  %v348_v26 = vld [vmem:[%s503_s3 + $0x8] sm:$0xff]  ;;  %v93_v37 = vperm.slane %v30_v4, 1  ;;  %v95_v39 = vperm.slane %v30_v4, 2  ;;  %v358_v0 = vld [vmem:[%s505_s5 + $0x18] sm:$0xff] }
   0x6   :  { %60 = vmatpush.bf16.msra.mxu0 %v345_v1  ;;  %v347_v27 = vld [vmem:[%s503_s3] sm:$0xff]  ;;  %260 = vmatpush.bf16.msra.mxu2 %v358_v0  ;;  %v357_v1 = vld [vmem:[%s505_s5 + $0x10] sm:$0xff]  ;;  %v356_v2 = vld [vmem:[%s505_s5 + $0x8] sm:$0xff]  ;;  %vm269_vm12 = vcmask 130048  }
   0x7   :  { %167 = vmatpush.bf16.msra.mxu1 %v353_v21  ;;  %v31_v46 = vld [vmem:[%s504_s4] sm:$0x7] }
   0x8   :  { %v117_v47 = vperm.slane %v31_v46, 0 }
   0x9   :  { %295 = vmatmul.msk.bf16.vlgmr.msra.gmra.mxu0 %vm49_vm0, %v29_v3  ;;  %v364_v10 = vpop.eup %363  ;;  %v355_v3 = vld [vmem:[%s505_s5] sm:$0xff] }
   0xa   :  { %v69_v11 = vmul.f32 128.0, %v364_v10  ;;  %vm73_vm1 = vweird.f32 %v364_v10  ;;  %261 = vmatpush.bf16.msra.mxu2 %v357_v1 }
   0xb   :  { %168 = vmatpush.bf16.msra.mxu1 %v352_v22  ;;  %v362_v22 = vld [vmem:[%s506_s6] ss:$0 sm:$0xff] }
   0xc   :  { %v70_v12 = vsub.f32 1.0, %v69_v11 }
   0xe   :  { %v71_v13 = vmul.f32 %v364_v10, %v70_v12  ;;  %262 = vmatpush.bf16.msra.mxu2 %v356_v2 }
   0xf   :  { %169 = vmatpush.bf16.msra.mxu1 %v351_v23 }
  0x10   :  { %v72_v14 = vadd.f32 %v364_v10, %v71_v13  ;;  %v209_v13 = vperm.slane %v31_v46, 1 }
  0x12   :  { %v74_v15 = vsel %vm73_vm1, %v364_v10, %v72_v14  ;;  %263 = vmatpush.bf16.msra.mxu2 %v355_v3 }
  0x13   :  { %170 = vmatpush.bf16.msra.mxu1 %v350_v24 }
  0x17   :  { %171 = vmatpush.bf16.msra.mxu1 %v349_v25 }
  0x1b   :  { %172 = vmatpush.bf16.msra.mxu1 %v348_v26 }
  0x1f   :  { %173 = vmatpush.bf16.msra.mxu1 %v347_v27 }
  0x86   :  { %v62_v6 = vpop.f32.mrf.mxu0 }
  0x87   :  { %v63_v7 = vadd.f32 %v62_v6, %v36_v5 }
  0x89   :  { %66 = vadd.xlane.f32.xlu0 %v63_v7 }
  0x8e   :  { %v64_v8 = vpop.f32.mrf.mxu0 }
  0xfc   :  { %v67_v16 = vpop.xlane.xlu0 %66 }
  0xfd   :  { %v75_v17 = vmul.f32 %v74_v15, %v67_v16 }
  0xff   :  { %v76_v18 = vsub.f32 %v63_v7, %v75_v17 }
 0x101   :  { %v77_v19 = vmul.f32 %v76_v18, %v76_v18 }
 0x103   :  { %78 = vadd.xlane.f32.xlu0 %v77_v19 }
 0x176   :  { %v79_v28 = vpop.xlane.xlu0 %78 }
 0x177   :  { %v80_v29 = vmul.f32 %v79_v28, %v74_v15  ;;  %v211_v15 = vperm.slane %v31_v46, 2 }
 0x179   :  { %v81_v30 = vadd.f32 1e-05, %v80_v29 }
 0x17b   :  { %365 = vrsqrt.f32 %v81_v30  ;;  %vm88_vm3 = vweird.f32 %v81_v30 }
 0x17c   :  { %367 = vrcp.f32 %v398_v52 }
 0x181   :  { %v366_v31 = vpop.eup %365 }
 0x182   :  { %v83_v32 = vmul.f32 %v366_v31, %v81_v30  ;;  %vm89_vm2 = vweird.f32 %v366_v31  ;;  %v368_v53 = vpop.eup %367 }
 0x183   :  { %vm90_vm4 = vmor %vm88_vm3, %vm89_vm2  ;;  %v184_v54 = vmul.f32 64.0, %v368_v53  ;;  %vm188_vm7 = vweird.f32 %v368_v53 }
 0x184   :  { %v84_v33 = vmul.f32 %v366_v31, %v83_v32 }
 0x185   :  { %v185_v55 = vsub.f32 1.0, %v184_v54 }
 0x186   :  { %v85_v34 = vmul.f32 0.5, %v84_v33 }
 0x187   :  { %v186_v56 = vmul.f32 %v368_v53, %v185_v55 }
 0x188   :  { %v86_v35 = vsub.f32 1.5, %v85_v34 }
 0x189   :  { %v187_v57 = vadd.f32 %v368_v53, %v186_v56 }
 0x18a   :  { %v87_v36 = vmul.f32 %v366_v31, %v86_v35 }
 0x18b   :  { %v189_v58 = vsel %vm188_vm7, %v368_v53, %v187_v57 }
 0x18c   :  { %v91_v38 = vsel %vm90_vm4, %v366_v31, %v87_v36 }
 0x18d   :  { %v92_v40 = vmul.f32 %v91_v38, %v76_v18 }
 0x18f   :  { %v94_v41 = vmul.f32 %v93_v37, %v92_v40 }
 0x191   :  { %v96_v42 = vadd.f32 %v95_v39, %v94_v41 }
 0x193   :  { %vm97_vm5 = vcmp.gt.f32.partialorder %v96_v42, 0.0  ;;  %v98_v43 = vmul.f32 0.01, %v96_v42 }
 0x195   :  { %v99_v44 = vsel %vm97_vm5, %v96_v42, %v98_v43 }
 0x196   :  { %v100_v45 = vpack.c.bf16 %v99_v44, %v99_v44 }
 0x198   :  { %174 = vmatmul.bf16.vlgmr.msra.gmra.mxu1 %v100_v45 }
 0x215   :  { %v175_v48 = vpop.f32.mrf.mxu1 }
 0x216   :  { %v176_v49 = vadd.f32 %v175_v48, %v117_v47 }
 0x218   :  { %v180_v50 = vsel %vm179_vm6, %v176_v49, 0.0 }
 0x219   :  { %181 = vadd.xlane.f32.xlu1 %v180_v50 }
 0x21d   :  { %v177_v51 = vpop.f32.mrf.mxu1 }
 0x28c   :  { %v182_v59 = vpop.xlane.xlu1 %181 }
 0x28d   :  { %v190_v60 = vmul.f32 %v189_v58, %v182_v59 }
 0x28f   :  { %v191_v61 = vsub.f32 %v176_v49, %v190_v60 }
 0x291   :  { %v192_v62 = vmul.f32 %v191_v61, %v191_v61 }
 0x293   :  { %v193_v63 = vsel %vm179_vm6, %v192_v62, 0.0 }
 0x294   :  { %194 = vadd.xlane.f32.xlu1 %v193_v63 }
 0x307   :  { %v195_v4 = vpop.xlane.xlu1 %194 }
 0x308   :  { %v196_v5 = vmul.f32 %v195_v4, %v189_v58 }
 0x30a   :  { %v197_v6 = vadd.f32 1e-05, %v196_v5 }
 0x30c   :  { %369 = vrsqrt.f32 %v197_v6  ;;  %vm204_vm9 = vweird.f32 %v197_v6 }
 0x312   :  { %v370_v7 = vpop.eup %369 }
 0x313   :  { %v199_v8 = vmul.f32 %v370_v7, %v197_v6  ;;  %vm205_vm8 = vweird.f32 %v370_v7 }
 0x314   :  { %vm206_vm10 = vmor %vm204_vm9, %vm205_vm8 }
 0x315   :  { %v200_v9 = vmul.f32 %v370_v7, %v199_v8 }
 0x317   :  { %v201_v10 = vmul.f32 0.5, %v200_v9 }
 0x319   :  { %v202_v11 = vsub.f32 1.5, %v201_v10 }
 0x31b   :  { %v203_v12 = vmul.f32 %v370_v7, %v202_v11 }
 0x31d   :  { %v207_v14 = vsel %vm206_vm10, %v370_v7, %v203_v12 }
 0x31e   :  { %v208_v16 = vmul.f32 %v207_v14, %v191_v61 }
 0x320   :  { %v210_v17 = vmul.f32 %v209_v13, %v208_v16 }
 0x322   :  { %v212_v18 = vadd.f32 %v211_v15, %v210_v17 }
 0x324   :  { %vm213_vm11 = vcmp.gt.f32.partialorder %v212_v18, 0.0  ;;  %v214_v19 = vmul.f32 0.01, %v212_v18 }
 0x326   :  { %v215_v20 = vsel %vm213_vm11, %v212_v18, %v214_v19 }
 0x327   :  { %v216_v21 = vpack.c.bf16 %v215_v20, %v215_v20 }
 0x329   :  { %344 = vmatmul.msk.bf16.vlgmr.msra.gmra.mxu2 %vm179_vm6, %v216_v21 }
 0x3ac   :  { %v265_v23 = vpop.f32.mrf.mxu2 }
 0x3ad   :  { %v266_v24 = vadd.f32 %v362_v22, %v265_v23 }
 0x3af   :  { %270 = vst.msk [vmem:[#allocation2] sm:$0xff] %vm269_vm12, %v266_v24 }
 0x3b0   :  { %281 = dma.vmem_to_hbm [thread:$0]  %s277_s0, 128, %s279_s9, [#allocation3]  }
 0x3b4   :  { %v267_v25 = vpop.f32.mrf.mxu2 }
 0x3b5   :  { %395 = dma.done.wait [#allocation3], 128  }
 0x3b6   :  { %396 = vsyncadd [#allocation3], 4294967168 }
 0x3b7   :  { %286 = vsyncpa [#allocation3], 1 }

</bundles_post_ra>
